<compile_context>
chip_gen: v7x
topology: tpu7x:2x2x1
jax: 0.10.0
libtpu: 0.0.40
codegen_flags: <defaults>
</compile_context>

<pallas_src>
import numpy as np

import jax
import jax.numpy as jnp
from jax.experimental import pallas as pl
from jax.experimental.pallas import tpu as pltpu


_BT = 8                      # images per grid step (keep a multiple of 8)
_R = 36 * _BT                # rows per grid step (36 padded rows per image)


# ---------------------------------------------------------------------------
# Parameters (deterministic, mirrors _weights_init shapes/flavor)
# ---------------------------------------------------------------------------
def init_params(key, num_classes=2):
    k = jax.random.split(key, 5)

    def kaiming_fan_out(kk, shape):          # conv weight (Cout, Cin, kh, kw)
        fan_out = shape[0] * shape[2] * shape[3]
        return jax.random.normal(kk, shape, jnp.float32) * jnp.sqrt(2.0 / fan_out)

    def xavier(kk, shape):                   # linear weight (out, in)
        fan_out, fan_in = shape
        return jax.random.normal(kk, shape, jnp.float32) * jnp.sqrt(
            2.0 / (fan_in + fan_out))

    return {
        "conv1_w": kaiming_fan_out(k[0], (6, 3, 5, 5)),
        "conv1_b": jnp.zeros((6,), jnp.float32),
        "conv2_w": kaiming_fan_out(k[1], (16, 6, 5, 5)),
        "conv2_b": jnp.zeros((16,), jnp.float32),
        "fc1_w": xavier(k[2], (120, 16 * 8 * 8)),
        "fc1_b": jnp.zeros((120,), jnp.float32),
        "fc2_w": xavier(k[3], (84, 120)),
        "fc2_b": jnp.zeros((84,), jnp.float32),
        "fc3_w": xavier(k[4], (num_classes, 84)),
        "fc3_b": jnp.zeros((num_classes,), jnp.float32),
    }


# ---------------------------------------------------------------------------
# One-time weight packing (init-time glue, numpy).
#   conv weights -> banded per-dh matrices (conv == 5 matmuls, no im2col);
#   pool-1 lane selection folded into conv2 bands; pool-2 lane selection and
#   the torch NCHW flatten folded into fc1; everything lane-padded to 128/256.
# ---------------------------------------------------------------------------
_PACK_ORDER = ("g1", "b1", "g2", "b2", "a1", "bf1", "wf2", "bf2",
               "wf3", "bf3", "fsel", "rowmask")


def pack_params(params):
    W1 = np.asarray(params["conv1_w"], np.float32)   # (6, 3, 5, 5)
    b1 = np.asarray(params["conv1_b"], np.float32)
    W2 = np.asarray(params["conv2_w"], np.float32)   # (16, 6, 5, 5)
    b2 = np.asarray(params["conv2_b"], np.float32)
    F1 = np.asarray(params["fc1_w"], np.float32)     # (120, 1024)
    F2 = np.asarray(params["fc2_w"], np.float32)     # (84, 120)
    F3 = np.asarray(params["fc3_w"], np.float32)     # (nc, 84)
    nc = F3.shape[0]

    # conv1 bands, K padded 108->128, N padded 192->256:
    #   input lane = wp*3 + c (wp in [0,36)), output lane = w*6 + co (w in [0,32)).
    g1 = np.zeros((5, 128, 256), np.float32)
    for dh in range(5):
        for dw in range(5):
            blk = W1[:, :, dh, dw].T                 # (cin=3, cout=6)
            for w in range(32):
                wp = w + dw
                g1[dh, wp * 3:(wp + 1) * 3, w * 6:(w + 1) * 6] = blk
    b1row = np.zeros((1, 256), np.float32)
    b1row[0, :192] = np.tile(b1, 32)                 # lane w*6+co -> b1[co]

    # conv2 bands with the pool-1 lane selection folded in:
    #   input lane  = 2*w_in*6 + c (pool-1 layout, w_in in [0,16)),
    #   output lane = w2*16 + co   (w2 in [0,16)).  Lane zero-padding of the
    #   conv is handled by the 0<=w_in<16 check; row zero-padding comes from
    #   the zeroed inter-image rows (see rowmask + circular rolls in kernel).
    g2 = np.zeros((5, 256, 256), np.float32)
    for dh in range(5):
        for dw in range(5):
            blk = W2[:, :, dh, dw].T                 # (cin=6, cout=16)
            for w2 in range(16):
                w_in = w2 + dw - 2
                if 0 <= w_in < 16:
                    g2[dh, 2 * w_in * 6:2 * w_in * 6 + 6,
                       w2 * 16:(w2 + 1) * 16] = blk
    b2row = np.tile(b2, 16)[None, :]                 # (1, 256): lane w2*16+co

    # fc1 with pool-2 lane selection and torch NCHW flatten folded in:
    #   pooled feature (co, h3, w3) lives at p2 lane 2*w3*16 + co of pooled row
    #   h3; torch flat index is co*64 + h3*8 + w3.  N padded 120 -> 128.
    a1 = np.zeros((8, 256, 128), np.float32)
    for h3 in range(8):
        for w3 in range(8):
            for co in range(16):
                a1[h3, 2 * w3 * 16 + co, :120] = F1[:, co * 64 + h3 * 8 + w3]
    bf1 = np.zeros((1, 128), np.float32)
    bf1[0, :120] = np.asarray(params["fc1_b"], np.float32)

    wf2 = np.zeros((128, 128), np.float32)
    wf2[:120, :84] = F2.T
    bf2 = np.zeros((1, 128), np.float32)
    bf2[0, :84] = np.asarray(params["fc2_b"], np.float32)

    wf3 = np.zeros((128, 128), np.float32)           # output padded to 128 lanes
    wf3[:84, :nc] = F3.T
    bf3 = np.zeros((1, 128), np.float32)
    bf3[0, :nc] = np.asarray(params["fc3_b"], np.float32)

    # Row gather for the FC tail: feat[h3*_BT + img, :] = p2[36*img + 4*h3, :].
    fsel = np.zeros((8 * _BT, _R), np.float32)
    for h3 in range(8):
        for img in range(_BT):
            fsel[h3 * _BT + img, 36 * img + 4 * h3] = 1.0

    # Zero the 4 junk rows between images after conv1; they double as conv2's
    # zero row-padding (circular rolls land exactly on them).
    rowmask = ((np.arange(_R) % 36) < 32).astype(np.float32).reshape(_R, 1)

    bf16 = jnp.bfloat16
    return {
        "g1": jnp.asarray(g1, bf16),
        "b1": jnp.asarray(b1row, jnp.float32),
        "g2": jnp.asarray(g2, bf16),
        "b2": jnp.asarray(b2row, jnp.float32),
        "a1": jnp.asarray(a1, bf16),
        "bf1": jnp.asarray(bf1, jnp.float32),
        "wf2": jnp.asarray(wf2, bf16),
        "bf2": jnp.asarray(bf2, jnp.float32),
        "wf3": jnp.asarray(wf3, bf16),
        "bf3": jnp.asarray(bf3, jnp.float32),
        "fsel": jnp.asarray(fsel, bf16),
        "rowmask": jnp.asarray(rowmask, jnp.float32),
    }


# ---------------------------------------------------------------------------
# pltpu.roll rotation-direction probe (run once).  The main kernel bakes in
# static shifts, so we detect whether pltpu.roll follows the jnp.roll
# convention (out[i] = x[i - shift]) and pick the sign accordingly.
# ---------------------------------------------------------------------------
_ROLL_SIGN = []


def _roll_sign():
    if not _ROLL_SIGN:
        def probe(x_ref, o_ref):
            o_ref[...] = pltpu.roll(x_ref[...], 1, 1)

        x = jnp.tile(jnp.arange(128, dtype=jnp.float32)[None, :], (8, 1))
        y = pl.pallas_call(
            probe, out_shape=jax.ShapeDtypeStruct((8, 128), jnp.float32))(x)
        _ROLL_SIGN.append(1 if bool(jnp.allclose(y, jnp.roll(x, 1, 1))) else -1)
    return _ROLL_SIGN[0]


# ---------------------------------------------------------------------------
# Fused Pallas kernel: one grid step == B_T images end-to-end.
# Activations are stacked along the sublane axis (36 rows / image).
# ---------------------------------------------------------------------------
def _lenet_kernel(x_ref, g1_ref, b1_ref, g2_ref, b2_ref, a1_ref, bf1_ref,
                  wf2_ref, bf2_ref, wf3_ref, bf3_ref, fsel_ref, mask_ref,
                  out_ref):
    f32 = jnp.float32
    bf16 = jnp.bfloat16
    bt = out_ref.shape[0]                       # images in this tile
    sign = _roll_sign()

    def sh(a, k, axis):
        # out[i] = a[(i + k) % n] along `axis` (k may be negative) -- XLU roll.
        n = a.shape[axis]
        k = k % n
        if k == 0:
            return a
        return pltpu.roll(a, (-sign * k) % n, axis)

    def mxu(a, b):
        # bf16 x bf16 MXU matmul with f32 accumulation.
        return jnp.dot(a.astype(bf16), b.astype(bf16),
                       preferred_element_type=f32)

    x = x_ref[...].astype(f32)                  # (bt*36, 128), lane = wp*3 + c

    # ---- conv1 + bias + ReLU: 5 banded matmuls --------------- (R, 256)
    y1 = mxu(x, g1_ref[0])
    for dh in range(1, 5):
        y1 = y1 + mxu(sh(x, dh, 0), g1_ref[dh])
    # Mask zeroes the 4 inter-image rows (they become conv2's zero padding).
    y1 = jnp.maximum(y1 + b1_ref[...], 0.0) * mask_ref[...]

    # ---- 2x2 max-pool #1 (XLU rolls + VPU max) ----------------
    m1 = jnp.maximum(y1, sh(y1, 1, 0))
    p1 = jnp.maximum(m1, sh(m1, 6, 1))          # valid at even rows / even w

    # ---- conv2 + bias + ReLU (pool-1 selection folded in g2) --
    y2 = mxu(sh(p1, -4, 0), g2_ref[0])
    for dh in range(1, 5):
        y2 = y2 + mxu(sh(p1, 2 * dh - 4, 0), g2_ref[dh])
    y2 = jnp.maximum(y2 + b2_ref[...], 0.0)

    # ---- 2x2 max-pool #2 --------------------------------------
    m2 = jnp.maximum(y2, sh(y2, 2, 0))
    p2 = jnp.maximum(m2, sh(m2, 16, 1))         # valid at rows 4*h3, lanes 2*w3*16+co

    # ---- gather the 8 pooled rows of every image (h3-major) --- (8*bt, 256)
    feat = mxu(fsel_ref[...], p2)

    # ---- fc1 (flatten + selection folded into a1) + ReLU ------ (bt, 128)
    h = mxu(feat[0:bt, :], a1_ref[0])
    for h3 in range(1, 8):
        h = h + mxu(feat[h3 * bt:(h3 + 1) * bt, :], a1_ref[h3])
    h = jnp.maximum(h + bf1_ref[...], 0.0)

    # ---- fc2 + ReLU, fc3 (lane-padded to 128) ------------------
    h = jnp.maximum(mxu(h, wf2_ref[...]) + bf2_ref[...], 0.0)
    out = mxu(h, wf3_ref[...]) + bf3_ref[...]
    out_ref[...] = out.astype(out_ref.dtype)


def lenet_cifar_forward(packed, x_nchw, num_classes=2):
    B = x_nchw.shape[0]
    bt = _BT
    n_tiles = max(1, -(-B // bt))
    Bp = n_tiles * bt

    # Layout glue (tiny, one XLA op chain): NCHW -> NHWC, spatial pad 2, fold
    # (W, C) into 108 lanes, pad lanes to 128, pad batch to a tile multiple,
    # stack images along rows, cast to bf16 to halve the input DMA.
    x = jnp.transpose(x_nchw, (0, 2, 3, 1)).astype(jnp.float32)    # (B,32,32,3)
    x = jnp.pad(x, ((0, Bp - B), (2, 2), (2, 2), (0, 0)))          # (Bp,36,36,3)
    x = x.reshape(Bp, 36, 108)
    x = jnp.pad(x, ((0, 0), (0, 0), (0, 20)))                      # (Bp,36,128)
    x = x.reshape(Bp * 36, 128).astype(jnp.bfloat16)

    consts = [packed[k] for k in _PACK_ORDER]

    def const_spec(a):
        nd = a.ndim
        return pl.BlockSpec(tuple(a.shape), lambda i, _nd=nd: (0,) * _nd)

    out = pl.pallas_call(
        _lenet_kernel,
        out_shape=jax.ShapeDtypeStruct((Bp, 128), jnp.float32),
        grid=(n_tiles,),
        in_specs=[pl.BlockSpec((bt * 36, 128), lambda i: (i, 0))]
                 + [const_spec(a) for a in consts],
        out_specs=pl.BlockSpec((bt, 128), lambda i: (i, 0)),
        compiler_params=pltpu.CompilerParams(
            dimension_semantics=("parallel",)),
    )(x, *consts)
    return out[:B, :num_classes]


# ---------------------------------------------------------------------------
# Pure-JAX reference (numerical check only)
# ---------------------------------------------------------------------------
def reference_forward(params, x_nchw):
    def conv(x, w, b):
        y = jax.lax.conv_general_dilated(
            x, w, window_strides=(1, 1), padding=((2, 2), (2, 2)),
            dimension_numbers=("NCHW", "OIHW", "NCHW"))
        return jax.nn.relu(y + b[None, :, None, None])

    def pool(x):
        return jax.lax.reduce_window(
            x, -jnp.inf, jax.lax.max, (1, 1, 2, 2), (1, 1, 2, 2), "VALID")

    x = pool(conv(x_nchw, params["conv1_w"], params["conv1_b"]))
    x = pool(conv(x, params["conv2_w"], params["conv2_b"]))
    x = x.reshape(x.shape[0], -1)
    x = jax.nn.relu(x @ params["fc1_w"].T + params["fc1_b"])
    x = jax.nn.relu(x @ params["fc2_w"].T + params["fc2_b"])
    return x @ params["fc3_w"].T + params["fc3_b"]


if __name__ == "__main__":
    key = jax.random.PRNGKey(0)
    pkey, xkey = jax.random.split(key)
    num_classes = 2
    params = init_params(pkey, num_classes=num_classes)
    packed = pack_params(params)

    # 32 CIFAR-sized images -> 4 grid steps of 8 images each (>=2 steps keeps
    # both v7x TensorCores busy via the "parallel" batch axis).
    x = jax.random.normal(xkey, (32, 3, 32, 32), jnp.float32)

    _ = _roll_sign()                       # resolve roll convention up front

    fwd = jax.jit(lenet_cifar_forward, static_argnums=(2,))
    out = jax.block_until_ready(fwd(packed, x, num_classes))
    assert out.shape == (32, num_classes), out.shape

    ref = jax.block_until_ready(reference_forward(params, x))
    # bf16 MXU operands (f32 accumulation) -> relaxed tolerance vs f32 reference.
    assert jnp.allclose(out, ref, atol=1e-1, rtol=1e-1), float(
        jnp.max(jnp.abs(out - ref)))

    print("KERNEL_OK")
</pallas_src>

<mosaic_0001>
module attributes {stable_mosaic.version = 11 : i64} {
  func.func @probe(%arg0: memref<8x128xf32, #tpu.memory_space<vmem>>, %arg1: memref<8x128xf32, #tpu.memory_space<vmem>>) attributes {dimension_semantics = [], scalar_prefetch = 0 : i64, scratch_operands = 0 : i64, tpu.core_type = #tpu.core_type<tc>} {
    %c0 = arith.constant 0 : index
    %c0_0 = arith.constant 0 : index
    %0 = vector.load %arg0[%c0, %c0_0] : memref<8x128xf32, #tpu.memory_space<vmem>>, vector<8x128xf32>
    %c1_i32 = arith.constant 1 : i32
    %1 = tpu.dynamic_rotate %0 by %c1_i32 dim 1 : vector<8x128xf32>, i32 -> vector<8x128xf32>
    %c0_1 = arith.constant 0 : index
    %c0_2 = arith.constant 0 : index
    %2 = vector.load %arg1[%c0_1, %c0_2] : memref<8x128xf32, #tpu.memory_space<vmem>>, vector<8x128xf32>
    tpu.vector_store %arg1[%c0_1, %c0_2], %1 {strides = array<i32>} : memref<8x128xf32, #tpu.memory_space<vmem>>, vector<8x128xf32>,
    return
  }
}

</mosaic_0001>

<bundles_post_ra>
// kernel: tpu_custom_call.1
= control target key start
LH: loop header
LB: loop body
LE: loop exit
PB: predicated region body
PF: predicated region fallthrough
CT: control target
= control target key end

     0   :  { %6 = vsyncpa [#allocation3], 0  ;;  %s128_s0 = inlined_call_operand.hbm [shape: f32[8,128], index: 0, kind: input, shape index: {}]   ;;  %s129_s1 = inlined_call_operand.hbm [shape: f32[8,128], index: 1, kind: output, shape index: {}]  }
   0x1   :  { %7 = vsyncpa [#allocation4], 0  ;;  %s91_s6 = smov [#allocation2]   ;;  %s43_s10 = scalar_lea.hbm %s128_s0, 128 }
   0x2   :  { %s14_s7 = sshll.u32 %s91_s6, 4  ;;  %p44_p0 = scmp.ne.s32.totalorder %s128_s0, %s43_s10  ;;  %s15_s7 = int_to_ptr.vmem [resolvable:$true] %s14_s7 }
   0x3   :  { %p47_p1 = scmp.lt.u32.totalorder %s43_s10, %s128_s0 }
   0x5   :  { %p49_p2 = pnand %p47_p1, %p44_p0 }
   0x7   :  { %52 = shalt.err (!%p49_p2)
}
   0x8   :  { %s53_s15 = scalar_lea.vmem %s15_s7, 128  ;;  %p58_p4 = scmp.lt.s32.totalorder %s15_s7, %s15_s7 }
   0x9   :  { %p54_p3 = scmp.ne.s32.totalorder %s15_s7, %s53_s15  ;;  %p59_p5 = scmp.lt.s32.totalorder %s53_s15, %s53_s15 }
   0xb   :  { %p60_p6 = por %p59_p5, %p58_p4 }
   0xd   :  { %p61_p7 = pnand %p60_p6, %p54_p3 }
   0xf   :  { %64 = shalt.err (!%p61_p7)
}
  0x10   :  { %17 = dma.hbm_to_vmem [thread:$0]  %s128_s0, 128, %s15_s7, [#allocation3]  }
  0x11   :  { %87 = dma.done.wait [#allocation3], 128  }
  0x12   :  { %88 = vsyncadd [#allocation3], 4294967168  ;;  %v21_v0 = vld [vmem:[#allocation2] sm:$0xff]  ;;  %s92_s18 = smov 1   ;;  %s93_s19 = smov [#allocation5]  }
  0x13   :  { %22 = vrot.lane.b32.xlu0 %v21_v0, %s92_s18  ;;  %s31_s20 = sshll.u32 %s93_s19, 4  ;;  %s32_s20 = int_to_ptr.vmem [resolvable:$true] %s31_s20 }
  0x14   :  { %s65_s21 = scalar_lea.vmem %s32_s20, 128  ;;  %p70_p9 = scmp.lt.s32.totalorder %s32_s20, %s32_s20 }
  0x15   :  { %p66_p8 = scmp.ne.s32.totalorder %s32_s20, %s65_s21  ;;  %p71_p10 = scmp.lt.s32.totalorder %s65_s21, %s65_s21 }
  0x17   :  { %p72_p11 = por %p71_p10, %p70_p9 }
  0x19   :  { %p73_p12 = pnand %p72_p11, %p66_p8 }
  0x85   :  { %v23_v1 = vpop.permute.xlu0 %22 }
  0x86   :  { %24 = vst [vmem:[#allocation5] sm:$0xff] %v23_v1 }
  0x87   :  { %76 = shalt.err (!%p73_p12)
}
  0x88   :  { %s77_s0 = scalar_lea.hbm %s129_s1, 128 }
  0x89   :  { %p78_p13 = scmp.ne.s32.totalorder %s129_s1, %s77_s0  ;;  %p81_p0 = scmp.lt.u32.totalorder %s77_s0, %s129_s1 }
  0x8b   :  { %p83_p1 = pnand %p81_p0, %p78_p13 }
  0x8d   :  { %86 = shalt.err (!%p83_p1)
}
  0x8e   :  { %34 = dma.vmem_to_hbm [thread:$0]  %s32_s20, 128, %s129_s1, [#allocation4]  }
  0x8f   :  { %89 = dma.done.wait [#allocation4], 128  }
  0x90   :  { %90 = vsyncadd [#allocation4], 4294967168 }
  0x91   :  { %38 = vsyncpa [#allocation3], 1 }
  0x92   :  { %39 = vsyncpa [#allocation4], 1 }

</bundles_post_ra>
